<compile_context>
chip_gen: v7x
topology: tpu7x:2x2x1
jax: 0.10.0
libtpu: 0.0.40
codegen_flags: <defaults>
</compile_context>

<pallas_src>
import functools

import jax
import jax.numpy as jnp
import numpy as np
from jax.experimental import pallas as pl
from jax.experimental.pallas import tpu as pltpu


def _residual_block_kernel(x_ref, w1_ref, b1_ref, w2_ref, wd_ref, b2d_ref,
                           out_ref, *, H, W, HWp):
    """One batch element per grid step.

    x_ref   : (1, Cin, HWp)    f32, channels-first, flattened (+padded) spatial
    w1_ref  : (9, Cout, Cin)   bf16, conv1 tap weights, t = ky*3 + kx
    b1_ref  : (Cout, 1)        f32
    w2_ref  : (9, Cout, Cout)  bf16, conv2 tap weights
    wd_ref  : (Cout, Cin)      bf16, 1x1 downsample conv weight
    b2d_ref : (Cout, 1)        f32, b2 + bd (biases folded together)
    out_ref : (1, Cout, HWp)   f32
    """
    HW = H * W
    pad = W + 1

    # Edge / row-wrap masks: one iota+compare per grid step, multiplicative so
    # each tap correction is a single VPU multiply.
    lane = jax.lax.broadcasted_iota(jnp.int32, (1, HWp), 1)
    col = lane % W
    not_left = (col != 0).astype(jnp.bfloat16)        # kills dx = -1 row wrap
    not_right = (col != W - 1).astype(jnp.bfloat16)   # kills dx = +1 row wrap

    x = x_ref[0].astype(jnp.bfloat16)                 # (Cin, HWp)

    def conv3x3(act, w_taps_ref):
        """act (C, HWp) bf16 -> f32 (Cout, HWp) via 9 accumulating MXU matmuls."""
        c = act.shape[0]
        cout = w_taps_ref.shape[1]
        # Hoisted broadcasts of the masks to the tap shape (once per conv).
        m_l = jnp.broadcast_to(not_left, (c, HWp))
        m_r = jnp.broadcast_to(not_right, (c, HWp))
        zeros = jnp.zeros((c, pad), jnp.bfloat16)
        # Zero-extend the flat spatial axis by exactly W+1 each side: a tap
        # (dy, dx) is then a static lane-shifted slice; out-of-range rows (dy)
        # read the zero extension, row-wrapped columns (dx) are masked.
        ext = jnp.concatenate([zeros, act, zeros], axis=1)   # (C, HWp + 2*pad)
        acc = jnp.zeros((cout, HWp), jnp.float32)
        t = 0
        for dy in (-1, 0, 1):
            for dx in (-1, 0, 1):
                off = pad + dy * W + dx
                tap = jax.lax.slice_in_dim(ext, off, off + HWp, axis=1)
                if dx == 1:
                    tap = tap * m_r
                elif dx == -1:
                    tap = tap * m_l
                acc = acc + jnp.dot(w_taps_ref[t], tap,
                                    preferred_element_type=jnp.float32)
                t += 1
        return acc

    # conv1 (3x3, pad=1) + bias + ReLU
    y1 = jnp.maximum(conv3x3(x, w1_ref) + b1_ref[...], 0.0)
    if HWp > HW:
        # Zero the spatial pad columns so conv2's dy=+1 taps at the last image
        # row (which land in y1's pad region) read zeros.
        y1 = jnp.where(lane < HW, y1, 0.0)
    y1 = y1.astype(jnp.bfloat16)

    # conv2 (3x3, pad=1) with the 1x1 downsample fused in as a 10th
    # accumulating matmul; both biases are folded into b2d; final ReLU.
    acc2 = conv3x3(y1, w2_ref)
    acc2 = acc2 + jnp.dot(wd_ref[...], x, preferred_element_type=jnp.float32)
    out_ref[0] = jnp.maximum(acc2 + b2d_ref[...], 0.0).astype(out_ref.dtype)


def residual_block(x_nchw, params):
    """x_nchw: (N, Cin, H, W) f32.  params use PyTorch-native layouts:
       w1 (Cout, Cin, 3, 3), b1 (Cout,), w2 (Cout, Cout, 3, 3), b2 (Cout,),
       wd (Cout, Cin, 1, 1), bd (Cout,)."""
    N, Cin, H, W = x_nchw.shape
    Cout = params["w1"].shape[0]
    HW = H * W
    HWp = ((HW + 127) // 128) * 128      # lane-dense flattened spatial axis

    # Layout plumbing: metadata reshapes + tiny weight transforms.
    x_flat = x_nchw.reshape(N, Cin, HW)
    if HWp != HW:
        x_flat = jnp.pad(x_flat, ((0, 0), (0, 0), (0, HWp - HW)))
    # OIHW (Cout, Cin, ky, kx) -> (9, Cout, Cin) with t = ky*3 + kx, bf16.
    w1_t = jnp.transpose(params["w1"], (2, 3, 0, 1)).reshape(9, Cout, Cin).astype(jnp.bfloat16)
    w2_t = jnp.transpose(params["w2"], (2, 3, 0, 1)).reshape(9, Cout, Cout).astype(jnp.bfloat16)
    wd_m = params["wd"].reshape(Cout, Cin).astype(jnp.bfloat16)
    b1 = params["b1"].reshape(Cout, 1).astype(jnp.float32)
    b2d = (params["b2"] + params["bd"]).reshape(Cout, 1).astype(jnp.float32)

    # Explicit VMEM budget sized to the working set (double-buffered x/out
    # pipeline blocks + weights + in-kernel values) plus slack, capped at the
    # smallest physical VMEM (v7x: 64 MiB).
    pad_cols = W + 1
    weight_bytes = 2 * (9 * Cout * (Cin + Cout) + Cout * Cin) + 4 * 2 * Cout
    io_bytes = 4 * (Cin + Cout) * HWp
    act_bytes = (4 * 2 * Cout * HWp                            # f32 acc / y1
                 + 2 * (Cin + Cout) * (HWp + 2 * pad_cols)     # bf16 ext buffers
                 + 2 * 4 * Cout * HWp)                         # taps / masks headroom
    vmem_limit = int(min(64 * 1024 * 1024,
                         2 * (io_bytes + weight_bytes) + act_bytes + (16 << 20)))

    kernel = functools.partial(_residual_block_kernel, H=H, W=W, HWp=HWp)

    # TODO(synk): for large feature maps on v7x (e.g. 64ch x 56x56) add a
    # row-tile grid axis with a 1-row halo (element-offset blocks or manual
    # DMA) so per-step VMEM stays inside 64 MiB; also single-buffer the
    # constant-index weight blocks (pl.Buffered(1)) and lane-concatenate
    # several small images per step once the extra boundary masks are wired.
    out_flat = pl.pallas_call(
        kernel,
        out_shape=jax.ShapeDtypeStruct((N, Cout, HWp), x_nchw.dtype),
        grid=(N,),
        in_specs=[
            pl.BlockSpec((1, Cin, HWp), lambda n: (n, 0, 0)),      # x
            pl.BlockSpec((9, Cout, Cin), lambda n: (0, 0, 0)),     # w1 taps
            pl.BlockSpec((Cout, 1), lambda n: (0, 0)),             # b1
            pl.BlockSpec((9, Cout, Cout), lambda n: (0, 0, 0)),    # w2 taps
            pl.BlockSpec((Cout, Cin), lambda n: (0, 0)),           # wd
            pl.BlockSpec((Cout, 1), lambda n: (0, 0)),             # b2 + bd
        ],
        out_specs=pl.BlockSpec((1, Cout, HWp), lambda n: (n, 0, 0)),
        compiler_params=pltpu.CompilerParams(
            dimension_semantics=("parallel",),
            vmem_limit_bytes=vmem_limit),
    )(x_flat, w1_t, b1, w2_t, wd_m, b2d)

    out_flat = out_flat[..., :HW]                       # strip lane padding
    return out_flat.reshape(N, Cout, H, W)              # NCHW, no transpose


# ---------------------------- plain-JAX reference ----------------------------
def _conv_ref(x_nchw, w_oihw, b, pad):
    y = jax.lax.conv_general_dilated(
        x_nchw, w_oihw, window_strides=(1, 1),
        padding=[(pad, pad), (pad, pad)],
        dimension_numbers=("NCHW", "OIHW", "NCHW"),
    )
    return y + b.reshape(1, -1, 1, 1)


def residual_block_ref(x_nchw, params):
    y1 = jnp.maximum(_conv_ref(x_nchw, params["w1"], params["b1"], 1), 0.0)
    y2 = _conv_ref(y1, params["w2"], params["b2"], 1)
    ident = _conv_ref(x_nchw, params["wd"], params["bd"], 0)
    return jnp.maximum(y2 + ident, 0.0)


if __name__ == "__main__":
    N, Cin, Cout, H, W = 2, 4, 8, 16, 16

    key = jax.random.PRNGKey(0)
    kx, k1, k2, k3, k4, k5, k6 = jax.random.split(key, 7)

    x = jax.random.normal(kx, (N, Cin, H, W), jnp.float32)   # PyTorch-style NCHW

    # PyTorch-native OIHW weight layouts.
    params = {
        "w1": jax.random.normal(k1, (Cout, Cin, 3, 3), jnp.float32) / np.sqrt(9 * Cin),
        "b1": jax.random.normal(k2, (Cout,), jnp.float32) * 0.1,
        "w2": jax.random.normal(k3, (Cout, Cout, 3, 3), jnp.float32) / np.sqrt(9 * Cout),
        "b2": jax.random.normal(k4, (Cout,), jnp.float32) * 0.1,
        "wd": jax.random.normal(k5, (Cout, Cin, 1, 1), jnp.float32) / np.sqrt(Cin),
        "bd": jax.random.normal(k6, (Cout,), jnp.float32) * 0.1,
    }

    out = jax.block_until_ready(residual_block(x, params))
    ref = jax.block_until_ready(residual_block_ref(x, params))

    assert out.shape == (N, Cout, H, W), out.shape
    # bf16 MXU matmuls with f32 accumulation -> relaxed tolerance vs f32 ref.
    np.testing.assert_allclose(np.asarray(out), np.asarray(ref), rtol=5e-2, atol=5e-2)

    print("KERNEL_OK")
</pallas_src>

<mosaic_0001>
module attributes {stable_mosaic.version = 11 : i64} {
  func.func @_residual_block_kernel(%arg0: i32, %arg1: memref<1x4x256xf32, #tpu.memory_space<vmem>>, %arg2: memref<9x8x4xbf16, #tpu.memory_space<vmem>>, %arg3: memref<8x1xf32, #tpu.memory_space<vmem>>, %arg4: memref<9x8x8xbf16, #tpu.memory_space<vmem>>, %arg5: memref<8x4xbf16, #tpu.memory_space<vmem>>, %arg6: memref<8x1xf32, #tpu.memory_space<vmem>>, %arg7: memref<1x8x256xf32, #tpu.memory_space<vmem>>) attributes {dimension_semantics = [#tpu.dimension_semantics<parallel>], iteration_bounds = array<i64: 2>, scalar_prefetch = 0 : i64, scratch_operands = 0 : i64, tpu.core_type = #tpu.core_type<tc>, window_params = [{transform_indices = @transform_0, window_bounds = array<i64: 1, 4, 256>}, {pipeline_mode = #tpu.pipeline_mode<synchronous>, transform_indices = @transform_1, window_bounds = array<i64: 9, 8, 4>}, {pipeline_mode = #tpu.pipeline_mode<synchronous>, transform_indices = @transform_2, window_bounds = array<i64: 8, 1>}, {pipeline_mode = #tpu.pipeline_mode<synchronous>, transform_indices = @transform_3, window_bounds = array<i64: 9, 8, 8>}, {pipeline_mode = #tpu.pipeline_mode<synchronous>, transform_indices = @transform_4, window_bounds = array<i64: 8, 4>}, {pipeline_mode = #tpu.pipeline_mode<synchronous>, transform_indices = @transform_5, window_bounds = array<i64: 8, 1>}, {transform_indices = @transform_6, window_bounds = array<i64: 1, 8, 256>}]} {
    %0 = tpu.iota {dimensions = array<i32: 1>} : vector<1x256xi32>
    %c16_i32 = arith.constant 16 : i32
    %c0_i32 = arith.constant 0 : i32
    %1 = arith.cmpi eq, %c16_i32, %c0_i32 : i32
    %c1_i32 = arith.constant 1 : i32
    %2 = arith.select %1, %c1_i32, %c16_i32 : i32
    %3 = vector.broadcast %2 : i32 to vector<1x256xi32>
    %4 = arith.remsi %0, %3 : vector<1x256xi32>
    %c0_i32_0 = arith.constant 0 : i32
    %5 = vector.broadcast %c0_i32_0 : i32 to vector<1x256xi32>
    %6 = arith.cmpi ne, %4, %5 : vector<1x256xi32>
    %c0_i32_1 = arith.constant 0 : i32
    %7 = vector.broadcast %c0_i32_1 : i32 to vector<1x256xi32>
    %8 = arith.cmpi slt, %4, %7 : vector<1x256xi32>
    %c0_i32_2 = arith.constant 0 : i32
    %9 = arith.cmpi slt, %2, %c0_i32_2 : i32
    %10 = vector.broadcast %9 : i1 to vector<1x256xi1>
    %11 = vector.broadcast %10 : vector<1x256xi1> to vector<1x256xi1>
    %12 = arith.xori %8, %11 : vector<1x256xi1>
    %13 = arith.andi %12, %6 : vector<1x256xi1>
    %14 = vector.broadcast %2 : i32 to vector<1x256xi32>
    %15 = arith.addi %4, %14 : vector<1x256xi32>
    %16 = arith.select %13, %15, %4 : vector<1x256xi1>, vector<1x256xi32>
    %c0_i32_3 = arith.constant 0 : i32
    %17 = vector.broadcast %c0_i32_3 : i32 to vector<1x256xi32>
    %18 = arith.cmpi ne, %16, %17 : vector<1x256xi32>
    %19 = arith.extui %18 : vector<1x256xi1> to vector<1x256xi32>
    %20 = arith.sitofp %19 : vector<1x256xi32> to vector<1x256xf32>
    %21 = arith.truncf %20 : vector<1x256xf32> to vector<1x256xbf16>
    %c15_i32 = arith.constant 15 : i32
    %22 = vector.broadcast %c15_i32 : i32 to vector<1x256xi32>
    %23 = arith.cmpi ne, %16, %22 : vector<1x256xi32>
    %24 = arith.extui %23 : vector<1x256xi1> to vector<1x256xi32>
    %25 = arith.sitofp %24 : vector<1x256xi32> to vector<1x256xf32>
    %26 = arith.truncf %25 : vector<1x256xf32> to vector<1x256xbf16>
    %c0 = arith.constant 0 : index
    %c0_4 = arith.constant 0 : index
    %c0_5 = arith.constant 0 : index
    %27 = vector.load %arg1[%c0, %c0_4, %c0_5] : memref<1x4x256xf32, #tpu.memory_space<vmem>>, vector<1x4x256xf32>
    %28 = vector.shape_cast %27 : vector<1x4x256xf32> to vector<4x256xf32>
    %29 = arith.truncf %28 : vector<4x256xf32> to vector<4x256xbf16>
    %30 = vector.shape_cast %21 : vector<1x256xbf16> to vector<1x256xbf16>
    %31 = vector.broadcast %30 : vector<1x256xbf16> to vector<4x256xbf16>
    %32 = vector.shape_cast %26 : vector<1x256xbf16> to vector<1x256xbf16>
    %33 = vector.broadcast %32 : vector<1x256xbf16> to vector<4x256xbf16>
    %cst = arith.constant 0.000000e+00 : bf16
    %34 = vector.broadcast %cst : bf16 to vector<4x17xbf16>
    %35 = tpu.concatenate %34, %29, %34 in 1 : vector<4x17xbf16>, vector<4x256xbf16>, vector<4x17xbf16> -> vector<4x290xbf16>
    %cst_6 = arith.constant 0.000000e+00 : f32
    %36 = vector.broadcast %cst_6 : f32 to vector<8x256xf32>
    %37 = vector.extract_strided_slice %35 {offsets = [0, 0], sizes = [4, 256], strides = [1, 1]} : vector<4x290xbf16> to vector<4x256xbf16>
    %38 = arith.mulf %37, %31 : vector<4x256xbf16>
    %c0_7 = arith.constant 0 : index
    %c0_8 = arith.constant 0 : index
    %c0_9 = arith.constant 0 : index
    %39 = vector.load %arg2[%c0_7, %c0_8, %c0_9] : memref<9x8x4xbf16, #tpu.memory_space<vmem>>, vector<1x8x4xbf16>
    %40 = vector.shape_cast %39 : vector<1x8x4xbf16> to vector<8x4xbf16>
    %cst_10 = arith.constant dense<0.000000e+00> : vector<8x256xf32>
    %41 = tpu.matmul %40, %38, %cst_10 {dimension_numbers = #tpu.dot_dimension_numbers<[1], [0], [0], [1], [0, 0, 1, 1], [], []>} : vector<8x4xbf16>, vector<4x256xbf16>, vector<8x256xf32> -> vector<8x256xf32>
    %42 = arith.addf %36, %41 : vector<8x256xf32>
    %43 = vector.extract_strided_slice %35 {offsets = [0, 1], sizes = [4, 256], strides = [1, 1]} : vector<4x290xbf16> to vector<4x256xbf16>
    %c1 = arith.constant 1 : index
    %c0_11 = arith.constant 0 : index
    %c0_12 = arith.constant 0 : index
    %44 = vector.load %arg2[%c1, %c0_11, %c0_12] : memref<9x8x4xbf16, #tpu.memory_space<vmem>>, vector<1x8x4xbf16>
    %45 = vector.shape_cast %44 : vector<1x8x4xbf16> to vector<8x4xbf16>
    %cst_13 = arith.constant dense<0.000000e+00> : vector<8x256xf32>
    %46 = tpu.matmul %45, %43, %cst_13 {dimension_numbers = #tpu.dot_dimension_numbers<[1], [0], [0], [1], [0, 0, 1, 1], [], []>} : vector<8x4xbf16>, vector<4x256xbf16>, vector<8x256xf32> -> vector<8x256xf32>
    %47 = arith.addf %42, %46 : vector<8x256xf32>
    %48 = vector.extract_strided_slice %35 {offsets = [0, 2], sizes = [4, 256], strides = [1, 1]} : vector<4x290xbf16> to vector<4x256xbf16>
    %49 = arith.mulf %48, %33 : vector<4x256xbf16>
    %c2 = arith.constant 2 : index
    %c0_14 = arith.constant 0 : index
    %c0_15 = arith.constant 0 : index
    %50 = vector.load %arg2[%c2, %c0_14, %c0_15] : memref<9x8x4xbf16, #tpu.memory_space<vmem>>, vector<1x8x4xbf16>
    %51 = vector.shape_cast %50 : vector<1x8x4xbf16> to vector<8x4xbf16>
    %cst_16 = arith.constant dense<0.000000e+00> : vector<8x256xf32>
    %52 = tpu.matmul %51, %49, %cst_16 {dimension_numbers = #tpu.dot_dimension_numbers<[1], [0], [0], [1], [0, 0, 1, 1], [], []>} : vector<8x4xbf16>, vector<4x256xbf16>, vector<8x256xf32> -> vector<8x256xf32>
    %53 = arith.addf %47, %52 : vector<8x256xf32>
    %54 = vector.extract_strided_slice %35 {offsets = [0, 16], sizes = [4, 256], strides = [1, 1]} : vector<4x290xbf16> to vector<4x256xbf16>
    %55 = arith.mulf %54, %31 : vector<4x256xbf16>
    %c3 = arith.constant 3 : index
    %c0_17 = arith.constant 0 : index
    %c0_18 = arith.constant 0 : index
    %56 = vector.load %arg2[%c3, %c0_17, %c0_18] : memref<9x8x4xbf16, #tpu.memory_space<vmem>>, vector<1x8x4xbf16>
    %57 = vector.shape_cast %56 : vector<1x8x4xbf16> to vector<8x4xbf16>
    %cst_19 = arith.constant dense<0.000000e+00> : vector<8x256xf32>
    %58 = tpu.matmul %57, %55, %cst_19 {dimension_numbers = #tpu.dot_dimension_numbers<[1], [0], [0], [1], [0, 0, 1, 1], [], []>} : vector<8x4xbf16>, vector<4x256xbf16>, vector<8x256xf32> -> vector<8x256xf32>
    %59 = arith.addf %53, %58 : vector<8x256xf32>
    %60 = vector.extract_strided_slice %35 {offsets = [0, 17], sizes = [4, 256], strides = [1, 1]} : vector<4x290xbf16> to vector<4x256xbf16>
    %c4 = arith.constant 4 : index
    %c0_20 = arith.constant 0 : index
    %c0_21 = arith.constant 0 : index
    %61 = vector.load %arg2[%c4, %c0_20, %c0_21] : memref<9x8x4xbf16, #tpu.memory_space<vmem>>, vector<1x8x4xbf16>
    %62 = vector.shape_cast %61 : vector<1x8x4xbf16> to vector<8x4xbf16>
    %cst_22 = arith.constant dense<0.000000e+00> : vector<8x256xf32>
    %63 = tpu.matmul %62, %60, %cst_22 {dimension_numbers = #tpu.dot_dimension_numbers<[1], [0], [0], [1], [0, 0, 1, 1], [], []>} : vector<8x4xbf16>, vector<4x256xbf16>, vector<8x256xf32> -> vector<8x256xf32>
    %64 = arith.addf %59, %63 : vector<8x256xf32>
    %65 = vector.extract_strided_slice %35 {offsets = [0, 18], sizes = [4, 256], strides = [1, 1]} : vector<4x290xbf16> to vector<4x256xbf16>
    %66 = arith.mulf %65, %33 : vector<4x256xbf16>
    %c5 = arith.constant 5 : index
    %c0_23 = arith.constant 0 : index
    %c0_24 = arith.constant 0 : index
    %67 = vector.load %arg2[%c5, %c0_23, %c0_24] : memref<9x8x4xbf16, #tpu.memory_space<vmem>>, vector<1x8x4xbf16>
    %68 = vector.shape_cast %67 : vector<1x8x4xbf16> to vector<8x4xbf16>
    %cst_25 = arith.constant dense<0.000000e+00> : vector<8x256xf32>
    %69 = tpu.matmul %68, %66, %cst_25 {dimension_numbers = #tpu.dot_dimension_numbers<[1], [0], [0], [1], [0, 0, 1, 1], [], []>} : vector<8x4xbf16>, vector<4x256xbf16>, vector<8x256xf32> -> vector<8x256xf32>
    %70 = arith.addf %64, %69 : vector<8x256xf32>
    %71 = vector.extract_strided_slice %35 {offsets = [0, 32], sizes = [4, 256], strides = [1, 1]} : vector<4x290xbf16> to vector<4x256xbf16>
    %72 = arith.mulf %71, %31 : vector<4x256xbf16>
    %c6 = arith.constant 6 : index
    %c0_26 = arith.constant 0 : index
    %c0_27 = arith.constant 0 : index
    %73 = vector.load %arg2[%c6, %c0_26, %c0_27] : memref<9x8x4xbf16, #tpu.memory_space<vmem>>, vector<1x8x4xbf16>
    %74 = vector.shape_cast %73 : vector<1x8x4xbf16> to vector<8x4xbf16>
    %cst_28 = arith.constant dense<0.000000e+00> : vector<8x256xf32>
    %75 = tpu.matmul %74, %72, %cst_28 {dimension_numbers = #tpu.dot_dimension_numbers<[1], [0], [0], [1], [0, 0, 1, 1], [], []>} : vector<8x4xbf16>, vector<4x256xbf16>, vector<8x256xf32> -> vector<8x256xf32>
    %76 = arith.addf %70, %75 : vector<8x256xf32>
    %77 = vector.extract_strided_slice %35 {offsets = [0, 33], sizes = [4, 256], strides = [1, 1]} : vector<4x290xbf16> to vector<4x256xbf16>
    %c7 = arith.constant 7 : index
    %c0_29 = arith.constant 0 : index
    %c0_30 = arith.constant 0 : index
    %78 = vector.load %arg2[%c7, %c0_29, %c0_30] : memref<9x8x4xbf16, #tpu.memory_space<vmem>>, vector<1x8x4xbf16>
    %79 = vector.shape_cast %78 : vector<1x8x4xbf16> to vector<8x4xbf16>
    %cst_31 = arith.constant dense<0.000000e+00> : vector<8x256xf32>
    %80 = tpu.matmul %79, %77, %cst_31 {dimension_numbers = #tpu.dot_dimension_numbers<[1], [0], [0], [1], [0, 0, 1, 1], [], []>} : vector<8x4xbf16>, vector<4x256xbf16>, vector<8x256xf32> -> vector<8x256xf32>
    %81 = arith.addf %76, %80 : vector<8x256xf32>
    %82 = vector.extract_strided_slice %35 {offsets = [0, 34], sizes = [4, 256], strides = [1, 1]} : vector<4x290xbf16> to vector<4x256xbf16>
    %83 = arith.mulf %82, %33 : vector<4x256xbf16>
    %c8 = arith.constant 8 : index
    %c0_32 = arith.constant 0 : index
    %c0_33 = arith.constant 0 : index
    %84 = vector.load %arg2[%c8, %c0_32, %c0_33] : memref<9x8x4xbf16, #tpu.memory_space<vmem>>, vector<1x8x4xbf16>
    %85 = vector.shape_cast %84 : vector<1x8x4xbf16> to vector<8x4xbf16>
    %cst_34 = arith.constant dense<0.000000e+00> : vector<8x256xf32>
    %86 = tpu.matmul %85, %83, %cst_34 {dimension_numbers = #tpu.dot_dimension_numbers<[1], [0], [0], [1], [0, 0, 1, 1], [], []>} : vector<8x4xbf16>, vector<4x256xbf16>, vector<8x256xf32> -> vector<8x256xf32>
    %87 = arith.addf %81, %86 : vector<8x256xf32>
    %c0_35 = arith.constant 0 : index
    %c0_36 = arith.constant 0 : index
    %88 = vector.load %arg3[%c0_35, %c0_36] : memref<8x1xf32, #tpu.memory_space<vmem>>, vector<8x1xf32>
    %89 = vector.broadcast %88 : vector<8x1xf32> to vector<8x256xf32>
    %90 = arith.addf %87, %89 : vector<8x256xf32>
    %cst_37 = arith.constant 0.000000e+00 : f32
    %91 = vector.broadcast %cst_37 : f32 to vector<8x256xf32>
    %92 = arith.maximumf %90, %91 : vector<8x256xf32>
    %93 = arith.truncf %92 : vector<8x256xf32> to vector<8x256xbf16>
    %94 = vector.shape_cast %21 : vector<1x256xbf16> to vector<1x256xbf16>
    %95 = vector.broadcast %94 : vector<1x256xbf16> to vector<8x256xbf16>
    %96 = vector.shape_cast %26 : vector<1x256xbf16> to vector<1x256xbf16>
    %97 = vector.broadcast %96 : vector<1x256xbf16> to vector<8x256xbf16>
    %cst_38 = arith.constant 0.000000e+00 : bf16
    %98 = vector.broadcast %cst_38 : bf16 to vector<8x17xbf16>
    %99 = tpu.concatenate %98, %93, %98 in 1 : vector<8x17xbf16>, vector<8x256xbf16>, vector<8x17xbf16> -> vector<8x290xbf16>
    %cst_39 = arith.constant 0.000000e+00 : f32
    %100 = vector.broadcast %cst_39 : f32 to vector<8x256xf32>
    %101 = vector.extract_strided_slice %99 {offsets = [0, 0], sizes = [8, 256], strides = [1, 1]} : vector<8x290xbf16> to vector<8x256xbf16>
    %102 = arith.mulf %101, %95 : vector<8x256xbf16>
    %c0_40 = arith.constant 0 : index
    %c0_41 = arith.constant 0 : index
    %c0_42 = arith.constant 0 : index
    %103 = vector.load %arg4[%c0_40, %c0_41, %c0_42] : memref<9x8x8xbf16, #tpu.memory_space<vmem>>, vector<1x8x8xbf16>
    %104 = vector.shape_cast %103 : vector<1x8x8xbf16> to vector<8x8xbf16>
    %cst_43 = arith.constant dense<0.000000e+00> : vector<8x256xf32>
    %105 = tpu.matmul %104, %102, %cst_43 {dimension_numbers = #tpu.dot_dimension_numbers<[1], [0], [0], [1], [0, 0, 1, 1], [], []>} : vector<8x8xbf16>, vector<8x256xbf16>, vector<8x256xf32> -> vector<8x256xf32>
    %106 = arith.addf %100, %105 : vector<8x256xf32>
    %107 = vector.extract_strided_slice %99 {offsets = [0, 1], sizes = [8, 256], strides = [1, 1]} : vector<8x290xbf16> to vector<8x256xbf16>
    %c1_44 = arith.constant 1 : index
    %c0_45 = arith.constant 0 : index
    %c0_46 = arith.constant 0 : index
    %108 = vector.load %arg4[%c1_44, %c0_45, %c0_46] : memref<9x8x8xbf16, #tpu.memory_space<vmem>>, vector<1x8x8xbf16>
    %109 = vector.shape_cast %108 : vector<1x8x8xbf16> to vector<8x8xbf16>
    %cst_47 = arith.constant dense<0.000000e+00> : vector<8x256xf32>
    %110 = tpu.matmul %109, %107, %cst_47 {dimension_numbers = #tpu.dot_dimension_numbers<[1], [0], [0], [1], [0, 0, 1, 1], [], []>} : vector<8x8xbf16>, vector<8x256xbf16>, vector<8x256xf32> -> vector<8x256xf32>
    %111 = arith.addf %106, %110 : vector<8x256xf32>
    %112 = vector.extract_strided_slice %99 {offsets = [0, 2], sizes = [8, 256], strides = [1, 1]} : vector<8x290xbf16> to vector<8x256xbf16>
    %113 = arith.mulf %112, %97 : vector<8x256xbf16>
    %c2_48 = arith.constant 2 : index
    %c0_49 = arith.constant 0 : index
    %c0_50 = arith.constant 0 : index
    %114 = vector.load %arg4[%c2_48, %c0_49, %c0_50] : memref<9x8x8xbf16, #tpu.memory_space<vmem>>, vector<1x8x8xbf16>
    %115 = vector.shape_cast %114 : vector<1x8x8xbf16> to vector<8x8xbf16>
    %cst_51 = arith.constant dense<0.000000e+00> : vector<8x256xf32>
    %116 = tpu.matmul %115, %113, %cst_51 {dimension_numbers = #tpu.dot_dimension_numbers<[1], [0], [0], [1], [0, 0, 1, 1], [], []>} : vector<8x8xbf16>, vector<8x256xbf16>, vector<8x256xf32> -> vector<8x256xf32>
    %117 = arith.addf %111, %116 : vector<8x256xf32>
    %118 = vector.extract_strided_slice %99 {offsets = [0, 16], sizes = [8, 256], strides = [1, 1]} : vector<8x290xbf16> to vector<8x256xbf16>
    %119 = arith.mulf %118, %95 : vector<8x256xbf16>
    %c3_52 = arith.constant 3 : index
    %c0_53 = arith.constant 0 : index
    %c0_54 = arith.constant 0 : index
    %120 = vector.load %arg4[%c3_52, %c0_53, %c0_54] : memref<9x8x8xbf16, #tpu.memory_space<vmem>>, vector<1x8x8xbf16>
    %121 = vector.shape_cast %120 : vector<1x8x8xbf16> to vector<8x8xbf16>
    %cst_55 = arith.constant dense<0.000000e+00> : vector<8x256xf32>
    %122 = tpu.matmul %121, %119, %cst_55 {dimension_numbers = #tpu.dot_dimension_numbers<[1], [0], [0], [1], [0, 0, 1, 1], [], []>} : vector<8x8xbf16>, vector<8x256xbf16>, vector<8x256xf32> -> vector<8x256xf32>
    %123 = arith.addf %117, %122 : vector<8x256xf32>
    %124 = vector.extract_strided_slice %99 {offsets = [0, 17], sizes = [8, 256], strides = [1, 1]} : vector<8x290xbf16> to vector<8x256xbf16>
    %c4_56 = arith.constant 4 : index
    %c0_57 = arith.constant 0 : index
    %c0_58 = arith.constant 0 : index
    %125 = vector.load %arg4[%c4_56, %c0_57, %c0_58] : memref<9x8x8xbf16, #tpu.memory_space<vmem>>, vector<1x8x8xbf16>
    %126 = vector.shape_cast %125 : vector<1x8x8xbf16> to vector<8x8xbf16>
    %cst_59 = arith.constant dense<0.000000e+00> : vector<8x256xf32>
    %127 = tpu.matmul %126, %124, %cst_59 {dimension_numbers = #tpu.dot_dimension_numbers<[1], [0], [0], [1], [0, 0, 1, 1], [], []>} : vector<8x8xbf16>, vector<8x256xbf16>, vector<8x256xf32> -> vector<8x256xf32>
    %128 = arith.addf %123, %127 : vector<8x256xf32>
    %129 = vector.extract_strided_slice %99 {offsets = [0, 18], sizes = [8, 256], strides = [1, 1]} : vector<8x290xbf16> to vector<8x256xbf16>
    %130 = arith.mulf %129, %97 : vector<8x256xbf16>
    %c5_60 = arith.constant 5 : index
    %c0_61 = arith.constant 0 : index
    %c0_62 = arith.constant 0 : index
    %131 = vector.load %arg4[%c5_60, %c0_61, %c0_62] : memref<9x8x8xbf16, #tpu.memory_space<vmem>>, vector<1x8x8xbf16>
    %132 = vector.shape_cast %131 : vector<1x8x8xbf16> to vector<8x8xbf16>
    %cst_63 = arith.constant dense<0.000000e+00> : vector<8x256xf32>
    %133 = tpu.matmul %132, %130, %cst_63 {dimension_numbers = #tpu.dot_dimension_numbers<[1], [0], [0], [1], [0, 0, 1, 1], [], []>} : vector<8x8xbf16>, vector<8x256xbf16>, vector<8x256xf32> -> vector<8x256xf32>
    %134 = arith.addf %128, %133 : vector<8x256xf32>
    %135 = vector.extract_strided_slice %99 {offsets = [0, 32], sizes = [8, 256], strides = [1, 1]} : vector<8x290xbf16> to vector<8x256xbf16>
    %136 = arith.mulf %135, %95 : vector<8x256xbf16>
    %c6_64 = arith.constant 6 : index
    %c0_65 = arith.constant 0 : index
    %c0_66 = arith.constant 0 : index
    %137 = vector.load %arg4[%c6_64, %c0_65, %c0_66] : memref<9x8x8xbf16, #tpu.memory_space<vmem>>, vector<1x8x8xbf16>
    %138 = vector.shape_cast %137 : vector<1x8x8xbf16> to vector<8x8xbf16>
    %cst_67 = arith.constant dense<0.000000e+00> : vector<8x256xf32>
    %139 = tpu.matmul %138, %136, %cst_67 {dimension_numbers = #tpu.dot_dimension_numbers<[1], [0], [0], [1], [0, 0, 1, 1], [], []>} : vector<8x8xbf16>, vector<8x256xbf16>, vector<8x256xf32> -> vector<8x256xf32>
    %140 = arith.addf %134, %139 : vector<8x256xf32>
    %141 = vector.extract_strided_slice %99 {offsets = [0, 33], sizes = [8, 256], strides = [1, 1]} : vector<8x290xbf16> to vector<8x256xbf16>
    %c7_68 = arith.constant 7 : index
    %c0_69 = arith.constant 0 : index
    %c0_70 = arith.constant 0 : index
    %142 = vector.load %arg4[%c7_68, %c0_69, %c0_70] : memref<9x8x8xbf16, #tpu.memory_space<vmem>>, vector<1x8x8xbf16>
    %143 = vector.shape_cast %142 : vector<1x8x8xbf16> to vector<8x8xbf16>
    %cst_71 = arith.constant dense<0.000000e+00> : vector<8x256xf32>
    %144 = tpu.matmul %143, %141, %cst_71 {dimension_numbers = #tpu.dot_dimension_numbers<[1], [0], [0], [1], [0, 0, 1, 1], [], []>} : vector<8x8xbf16>, vector<8x256xbf16>, vector<8x256xf32> -> vector<8x256xf32>
    %145 = arith.addf %140, %144 : vector<8x256xf32>
    %146 = vector.extract_strided_slice %99 {offsets = [0, 34], sizes = [8, 256], strides = [1, 1]} : vector<8x290xbf16> to vector<8x256xbf16>
    %147 = arith.mulf %146, %97 : vector<8x256xbf16>
    %c8_72 = arith.constant 8 : index
    %c0_73 = arith.constant 0 : index
    %c0_74 = arith.constant 0 : index
    %148 = vector.load %arg4[%c8_72, %c0_73, %c0_74] : memref<9x8x8xbf16, #tpu.memory_space<vmem>>, vector<1x8x8xbf16>
    %149 = vector.shape_cast %148 : vector<1x8x8xbf16> to vector<8x8xbf16>
    %cst_75 = arith.constant dense<0.000000e+00> : vector<8x256xf32>
    %150 = tpu.matmul %149, %147, %cst_75 {dimension_numbers = #tpu.dot_dimension_numbers<[1], [0], [0], [1], [0, 0, 1, 1], [], []>} : vector<8x8xbf16>, vector<8x256xbf16>, vector<8x256xf32> -> vector<8x256xf32>
    %151 = arith.addf %145, %150 : vector<8x256xf32>
    %c0_76 = arith.constant 0 : index
    %c0_77 = arith.constant 0 : index
    %152 = vector.load %arg5[%c0_76, %c0_77] : memref<8x4xbf16, #tpu.memory_space<vmem>>, vector<8x4xbf16>
    %cst_78 = arith.constant dense<0.000000e+00> : vector<8x256xf32>
    %153 = tpu.matmul %152, %29, %cst_78 {dimension_numbers = #tpu.dot_dimension_numbers<[1], [0], [0], [1], [0, 0, 1, 1], [], []>} : vector<8x4xbf16>, vector<4x256xbf16>, vector<8x256xf32> -> vector<8x256xf32>
    %154 = arith.addf %151, %153 : vector<8x256xf32>
    %c0_79 = arith.constant 0 : index
    %c0_80 = arith.constant 0 : index
    %155 = vector.load %arg6[%c0_79, %c0_80] : memref<8x1xf32, #tpu.memory_space<vmem>>, vector<8x1xf32>
    %156 = vector.broadcast %155 : vector<8x1xf32> to vector<8x256xf32>
    %157 = arith.addf %154, %156 : vector<8x256xf32>
    %cst_81 = arith.constant 0.000000e+00 : f32
    %158 = vector.broadcast %cst_81 : f32 to vector<8x256xf32>
    %159 = arith.maximumf %157, %158 : vector<8x256xf32>
    %c0_82 = arith.constant 0 : index
    %c0_83 = arith.constant 0 : index
    %c0_84 = arith.constant 0 : index
    %160 = vector.load %arg7[%c0_82, %c0_83, %c0_84] : memref<1x8x256xf32, #tpu.memory_space<vmem>>, vector<1x8x256xf32>
    %161 = vector.shape_cast %160 : vector<1x8x256xf32> to vector<8x256xf32>
    %162 = vector.shape_cast %159 : vector<8x256xf32> to vector<1x8x256xf32>
    tpu.vector_store %arg7[%c0_82, %c0_83, %c0_84], %162 {strides = array<i32>} : memref<1x8x256xf32, #tpu.memory_space<vmem>>, vector<1x8x256xf32>,
    return
  }
  func.func @transform_0(%arg0: i32) -> (i32, i32, i32) {
    %c0_i32 = arith.constant 0 : i32
    %c0_i32_0 = arith.constant 0 : i32
    %c0_i32_1 = arith.constant 0 : i32
    return %arg0, %c0_i32, %c0_i32_0 : i32, i32, i32
  }
  func.func @transform_1(%arg0: i32) -> (i32, i32, i32) {
    %c0_i32 = arith.constant 0 : i32
    %c0_i32_0 = arith.constant 0 : i32
    %c0_i32_1 = arith.constant 0 : i32
    %c0_i32_2 = arith.constant 0 : i32
    return %c0_i32, %c0_i32_0, %c0_i32_1 : i32, i32, i32
  }
  func.func @transform_2(%arg0: i32) -> (i32, i32) {
    %c0_i32 = arith.constant 0 : i32
    %c0_i32_0 = arith.constant 0 : i32
    %c0_i32_1 = arith.constant 0 : i32
    return %c0_i32, %c0_i32_0 : i32, i32
  }
  func.func @transform_3(%arg0: i32) -> (i32, i32, i32) {
    %c0_i32 = arith.constant 0 : i32
    %c0_i32_0 = arith.constant 0 : i32
    %c0_i32_1 = arith.constant 0 : i32
    %c0_i32_2 = arith.constant 0 : i32
    return %c0_i32, %c0_i32_0, %c0_i32_1 : i32, i32, i32
  }
  func.func @transform_4(%arg0: i32) -> (i32, i32) {
    %c0_i32 = arith.constant 0 : i32
    %c0_i32_0 = arith.constant 0 : i32
    %c0_i32_1 = arith.constant 0 : i32
    return %c0_i32, %c0_i32_0 : i32, i32
  }
  func.func @transform_5(%arg0: i32) -> (i32, i32) {
    %c0_i32 = arith.constant 0 : i32
    %c0_i32_0 = arith.constant 0 : i32
    %c0_i32_1 = arith.constant 0 : i32
    return %c0_i32, %c0_i32_0 : i32, i32
  }
  func.func @transform_6(%arg0: i32) -> (i32, i32, i32) {
    %c0_i32 = arith.constant 0 : i32
    %c0_i32_0 = arith.constant 0 : i32
    %c0_i32_1 = arith.constant 0 : i32
    return %arg0, %c0_i32, %c0_i32_0 : i32, i32, i32
  }
}

</mosaic_0001>

<bundles_post_ra>
// kernel: tpu_custom_call.1
= control target key start
LH: loop header
LB: loop body
LE: loop exit
PB: predicated region body
PF: predicated region fallthrough
CT: control target
= control target key end

     0   :  { %11 = vsyncpa [#allocation3], 0  ;;  %s2398_s0 = inlined_call_operand.vmem [shape: f32[2,4,256], index: 0, kind: input, shape index: {}]   ;;  %s2399_s1 = inlined_call_operand.vmem [shape: bf16[9,8,4], index: 1, kind: input, shape index: {}]   ;;  %s2400_s2 = inlined_call_operand.vmem [shape: f32[8,1], index: 2, kind: input, shape index: {}]   ;;  %s2401_s3 = inlined_call_operand.vmem [shape: bf16[9,8,8], index: 3, kind: input, shape index: {}]   ;;  %s2402_s4 = inlined_call_operand.vmem [shape: bf16[8,4], index: 4, kind: input, shape index: {}]   ;;  %s2403_s5 = inlined_call_operand.vmem [shape: f32[8,1], index: 5, kind: input, shape index: {}]   ;;  %s2404_s6 = inlined_call_operand.hbm [shape: f32[2,8,256], index: 6, kind: output, shape index: {}]  }
   0x1   :  { %13 = vsyncpa [#allocation3 + $0x1], 0  ;;  %s1946_s21 = smov 0   ;;  %s1948_s22 = smov 0  }
   0x2   :  { %s1950_s23 = smov 0   ;;  %s1952_s24 = smov 0  }
   0x3 LB: > { %s1967_s25 = sadd.s32 4294967295, %s1892_s24   ;;  %s1701_s26 = sadd.s32 4294967294, %s1892_s24   ;;  %s1892_s24 = sphi %s1952_s24, %s2410_s24   ;;  %s1888_s23 = sphi %s1950_s23, %s2409_s23   ;;  %s1884_s22 = sphi %s1948_s22, %s2408_s22   ;;  %s1880_s21 = sphi %s1946_s21, %s2407_s21  }
   0x4   : > { %s1971_s27 = sadd.s32 1, %s1892_s24   ;;  %s157_s28 = sadd.s32 1, %s1888_s23 }
   0x5   : > { %s154_s29 = ssub.s32 %s1892_s24, %s1971_s27  ;;  %p167_p0 = scmp.ne.s32.totalorder %s1888_s23, %s1884_s22 }
   0x6   : > { %p155_p1 = scmp.eq.s32.totalorder %s154_s29, 0  ;;  %p168_p2 = scmp.eq.s32.totalorder %s1967_s25, 1 }
   0x7   : > { %p173_p3 = scmp.ne.s32.totalorder %s1884_s22, %s1880_s21  ;;  %p174_p4 = scmp.eq.s32.totalorder %s1701_s26, 1 }
   0x8   : > { %s1982_s30 = scalar_select %p155_p1, %s1888_s23, %s157_s28  }
   0x9   : > { %p1984_p5 = por %p168_p2, %p167_p0  ;;  %p1988_p6 = por %p174_p4, %p173_p3 }
   0xa   : > { %p1704_p7 = scmp.ge.s32.totalorder %s1892_s24, 1  ;;  %p215_p8 = scmp.lt.s32.totalorder %s1892_s24, 3 }
   0xc   : > { %p216_p9 = pnand %p1704_p7, %p215_p8 }
   0xd   : > { %p245_p10 = scmp.lt.s32.totalorder (!%p216_p9), %s1967_s25, 1  ;;  %v251_v0 = vlaneseq (!%p216_p9)  ;;  %v1894_v8 = vmov (!%p216_p9), 0.0   ;;  %s1895_s14 = smov (!%p216_p9), 17   ;;  %vm306_vm4 = vcmask (!%p216_p9), 138240   ;;  %v1903_v21 = vmov (!%p216_p9), 0   ;;  %v955_v58 = vld [vmem:[%s2400_s2] sm:$0xff] (!%p216_p9) }
   0xe   : > { %219 = sbr.rel (%p216_p9) target bundleno = 1046 (0x416), region = 44  ;;  %s1896_s15 = smov (!%p216_p9), 2   ;;  %376 = vmatprep.mubr.bf16.mxu0 (!%p216_p9), %v1903_v21  ;;  %426 = vmatprep.mubr.bf16.mxu1 (!%p216_p9), %v1903_v21  ;;  %vm337_vm5 = vcmask (!%p216_p9), 1041408   ;;  %v319_v32 = vld [vmem:[%s2399_s1] sm:$0xf] (!%p216_p9)  ;;  %vm333_vm6 = vcmask (!%p216_p9), 31744  }
   0xf   : > { %v252_v1 = vand.u32 (!%p216_p9), 127, %v251_v0  ;;  %s1897_s16 = smov (!%p216_p9), 16   ;;  %s1898_s17 = smov (!%p216_p9), 18   ;;  %1828 = vset.pattern.permute.xlu0 (!%p216_p9), %v1903_v21  ;;  %vm441_vm7 = vcmask (!%p216_p9), 15360   ;;  %vm521_vm8 = vcmask (!%p216_p9), 130048   ;;  %vm662_vm9 = vcmask (!%p216_p9), 146432  }
  0x10   : > { %s1899_s18 = smov (!%p216_p9), 32   ;;  %s1900_s19 = smov (!%p216_p9), 34   ;;  %vm740_vm10 = vcmask (!%p216_p9), 261120   ;;  %vm881_vm11 = vcmask (!%p216_p9), 277504   ;;  %vm330_vm12 = vcmask (!%p216_p9), 1039360   ;;  %vm460_vm13 = vcmask (!%p216_p9), 1031168  }
  0x11   : > { %v258_v2 = vand.u32 (!%p216_p9), 15, %v252_v1  ;;  %v253_v3 = vadd.s32 (!%p216_p9), 128, %v252_v1  ;;  %s1901_s20 = smov (!%p216_p9), 111   ;;  %s1902_s26 = smov (!%p216_p9), 127   ;;  %vm603_vm14 = vcmask (!%p216_p9), 908288   ;;  %vm540_vm15 = vcmask (!%p216_p9), 916480  }
  0x12   : > { %s1906_s11 = smov (!%p216_p9), 96   ;;  %s1907_s12 = smov (!%p216_p9), 110  }
  0x13   : > { %vm286_vm0 = vcmp.ne.s32.totalorder (!%p216_p9), %v258_v2, 15  ;;  %v265_v5 = vand.u32 (!%p216_p9), 15, %v253_v3  ;;  %vm278_vm1 = vcmp.ne.s32.totalorder (!%p216_p9), %v258_v2, 0  ;;  %v1712_v2 = vld [vmem:[%s2399_s1 + $0x4] sm:$0xf] (!%p216_p9) }
  0x14   : > { %v1710_v9 = vsel (!%p216_p9), %vm286_vm0, 1.0, %v1894_v8  ;;  %v1708_v14 = vsel (!%p216_p9), %vm278_vm1, 1.0, %v1894_v8  ;;  %vm681_vm0 = vcmask (!%p216_p9), 900096   ;;  %vm759_vm1 = vcmask (!%p216_p9), 785408  }
  0x15   : > { %s246_s9 = scalar_select %p245_p10, %s1967_s25, 1  ;;  %v292_v10 = vpack.c.bf16 %v1710_v9, %v1710_v9  ;;  %vm287_vm2 = vcmp.ne.s32.totalorder %v265_v5, 15  ;;  %vm279_vm3 = vcmp.ne.s32.totalorder %v265_v5, 0  ;;  %v2007_v16 = vpack.c.bf16 %v1708_v14, %v1708_v14 }
  0x16   : > { %v1711_v12 = vsel %vm287_vm2, 1.0, %v1894_v8  ;;  %v1709_v15 = vsel %vm279_vm3, 1.0, %v1894_v8  ;;  %vm822_vm2 = vcmask 777216   ;;  %vm900_vm3 = vcmask 769024  }
  0x17   : > { %s1771_s10 = sshll.u32 %s246_s9, 3  ;;  %437 = vrot.lane.b32.xlu1 %v292_v10, %s1896_s15  ;;  %v293_v13 = vpack.c.bf16 %v1711_v12, %v1711_v12  ;;  %v2009_v17 = vpack.c.bf16 %v1709_v15, %v1709_v15  ;;  %s1904_s9 = smov 126  }
  0x18   : > { %s249_s13 = scalar_lea.vmem %s2398_s0, %s1771_s10  ;;  %s1905_s10 = smov 112  }
  0x19   : > { %v294_v4 = vld [vmem:[%s249_s13] sm:$0xff]  ;;  %s1908_s13 = smov 95  }
  0x1a   : > { %v1999_v6 = vpack.c.bf16 %v294_v4, %v294_v4  ;;  %v296_v7 = vcombine.high %v294_v4, %v294_v4 }
  0x1b   : > { %439 = vrot.lane.b32.xlu1 %v293_v13, %s1896_s15  ;;  %s1909_s15 = smov 94  }
  0x1c   : > { %302 = vrot.lane.b32.xlu0 %v1999_v6, %s1895_s14  ;;  %v2003_v11 = vpack.c.bf16 %v296_v7, %v296_v7 }
  0x1f   : > { %519 = vrot.lane.b32.xlu1 %v2009_v17, %s1897_s16 }
  0x20   : > { %304 = vrot.lane.b32.xlu0 %v2003_v11, %s1895_s14 }
  0x23   : > { %660 = vrot.lane.b32.xlu1 %v293_v13, %s1898_s17 }
  0x24   : > { %517 = vrot.lane.b32.xlu0 %v2007_v16, %s1897_s16 }
  0x27   : > { %738 = vrot.lane.b32.xlu1 %v2009_v17, %s1899_s18 }
  0x28   : > { %658 = vrot.lane.b32.xlu0 %v292_v10, %s1898_s17 }
  0x2b   : > { %879 = vrot.lane.b32.xlu1 %v293_v13, %s1900_s19 }
  0x2c   : > { %736 = vrot.lane.b32.xlu0 %v2007_v16, %s1899_s18 }
  0x30   : > { %877 = vrot.lane.b32.xlu0 %v292_v10, %s1900_s19 }
  0x89   : > { %v2018_v20 = vpop.permute.xlu1 %437 }
  0x8d   : > { %v2041_v27 = vpop.permute.xlu1 %439 }
  0x8e   : > { %v303_v18 = vpop.permute.xlu0 %302  ;;  %v2074_v38 = vsel %vm441_vm7, %v2018_v20, %v2041_v27  ;;  %vm1000_vm7 = vcmask 1043456  }
  0x8f   : > { %v2016_v19 = vsel %vm306_vm4, 0, %v303_v18 }
  0x90   : > { %597 = vrot.lane.b32.xlu1 %v2016_v19, %s1901_s20  ;;  %324 = vrot.lane.b32.xlu0 %v2016_v19, %s1902_s26  ;;  %v317_v23 = vmul.bf16 %v2016_v19, %v2007_v16  ;;  %v446_v28 = vmul.bf16 %v2018_v20, %v2016_v19 }
  0x91   : > { %v2059_v34 = vpop.permute.xlu1 %519 }
  0x92   : > { %v305_v22 = vpop.permute.xlu0 %304  ;;  %v389_v30 = vsel %vm337_vm5, %v317_v23, 0  ;;  %v1717_v23 = vld [vmem:[%s2399_s1 + $0x8] sm:$0xf] }
  0x93   : > { %v2030_v24 = vsel %vm306_vm4, %v303_v18, %v305_v22  ;;  %v2033_v25 = vsel %vm306_vm4, %v305_v22, 0 }
  0x94   : > { %328 = vrot.lane.b32.xlu0 %v2033_v25, %s1902_s26  ;;  %326 = vrot.lane.b32.xlu1 %v2030_v24, %s1902_s26  ;;  %v318_v26 = vmul.bf16 %v2030_v24, %v2009_v17  ;;  %v448_v35 = vmul.bf16 %v2041_v27, %v2033_v25  ;;  %v528_v36 = vmul.bf16 %v2059_v34, %v2033_v25 }
  0x95   : > { %v2077_v39 = vpop.permute.xlu1 %660  ;;  %v447_v42 = vmul.bf16 %v2074_v38, %v2030_v24 }
  0x96   : > { %1715 = vmatprep.subr.msk.bf16.mxu1 %vm337_vm5, %v318_v26  ;;  %v2046_v29 = vpop.permute.xlu0 %517  ;;  %v669_v48 = vmul.bf16 %v2077_v39, %v2033_v25 }
  0x97   : > { %v526_v31 = vmul.bf16 %v2046_v29, %v2016_v19  ;;  %395 = vmatpush1.bf16.msra.mxu1 %v389_v30  ;;  %v2084_v41 = vsel %vm521_vm8, %v2046_v29, %v2059_v34 }
  0x98   : > { %454 = vrot.lane.b32.xlu1 %v446_v28, %s1904_s9  ;;  %v527_v43 = vmul.bf16 %v2084_v41, %v2030_v24 }
  0x99   : > { %534 = vrot.lane.b32.xlu0 %v526_v31, %s1905_s10  ;;  %v2094_v45 = vpop.permute.xlu1 %738  ;;  %v1720_v31 = vld [vmem:[%s2399_s1 + $0xc] sm:$0xf] }
  0x9a   : > { %v2056_v33 = vpop.permute.xlu0 %658  ;;  %1716 = vmatmul.mubr.msk.bf16.vlgmr.msra.gmra.mrb[0].mxu1 %vm333_vm6, %v319_v32  ;;  %v747_v46 = vmul.bf16 %v2094_v45, %v2033_v25 }
  0x9b   : > { %584 = vmatprep.mubr.bf16.mxu1 %v1903_v21  ;;  %v667_v44 = vmul.bf16 %v2056_v33, %v2016_v19  ;;  %v2102_v47 = vsel %vm662_vm9, %v2056_v33, %v2077_v39 }
  0x9c   : > { %601 = vrot.lane.b32.xlu1 %v2033_v25, %s1901_s20  ;;  %v668_v49 = vmul.bf16 %v2102_v47, %v2030_v24 }
  0x9d   : > { %599 = vrot.lane.b32.xlu0 %v2030_v24, %s1901_s20  ;;  %v2123_v53 = vpop.permute.xlu1 %879 }
  0x9e   : > { %v2070_v37 = vpop.permute.xlu0 %736  ;;  %v888_v56 = vmul.bf16 %v2123_v53, %v2033_v25 }
  0x9f   : > { %v745_v40 = vmul.bf16 %v2070_v37, %v2016_v19  ;;  %v2112_v50 = vsel %vm740_vm10, %v2070_v37, %v2094_v45 }
  0xa0   : > { %458 = vrot.lane.b32.xlu1 %v448_v35, %s1904_s9  ;;  %v746_v52 = vmul.bf16 %v2112_v50, %v2030_v24 }
  0xa1   : > { %538 = vrot.lane.b32.xlu0 %v528_v36, %s1905_s10 }
  0xa2   : > { %v2117_v51 = vpop.permute.xlu0 %877 }
  0xa3   : > { %v886_v54 = vmul.bf16 %v2117_v51, %v2016_v19  ;;  %v2130_v55 = vsel %vm881_vm11, %v2117_v51, %v2123_v53 }
  0xa4   : > { %753 = vrot.lane.b32.xlu1 %v745_v40, %s1906_s11  ;;  %v887_v57 = vmul.bf16 %v2130_v55, %v2030_v24  ;;  %v1723_v40 = vld [vmem:[%s2399_s1 + $0x10] sm:$0xf] }
  0xa5   : > { %456 = vrot.lane.b32.xlu0 %v447_v42, %s1904_s9 }
  0xa8   : > { %536 = vrot.lane.b32.xlu1 %v527_v43, %s1905_s10 }
  0xa9   : > { %675 = vrot.lane.b32.xlu0 %v667_v44, %s1907_s12 }
  0xac   : > { %757 = vrot.lane.b32.xlu1 %v747_v46, %s1906_s11 }
  0xad   : > { %679 = vrot.lane.b32.xlu0 %v669_v48, %s1907_s12  ;;  %v1726_v48 = vld [vmem:[%s2399_s1 + $0x14] sm:$0xf] }
  0xb0   : > { %677 = vrot.lane.b32.xlu1 %v668_v49, %s1907_s12 }
  0xb1   : > { %816 = vrot.lane.b32.xlu0 %v2016_v19, %s1908_s13 }
  0xb4   : > { %818 = vrot.lane.b32.xlu1 %v2030_v24, %s1908_s13 }
  0xb5   : > { %755 = vrot.lane.b32.xlu0 %v746_v52, %s1906_s11 }
  0xb8   : > { %894 = vrot.lane.b32.xlu1 %v886_v54, %s1909_s15 }
  0xb9   : > { %820 = vrot.lane.b32.xlu0 %v2033_v25, %s1908_s13 }
  0xbc   : > { %898 = vrot.lane.b32.xlu1 %v888_v56, %s1909_s15 }
  0xbd   : > { %896 = vrot.lane.b32.xlu0 %v887_v57, %s1909_s15 }
  0xc1   : > { %958 = vperm.xlu0 %1828, %v955_v58  }
 0x102   : > { %v598_v59 = vpop.permute.xlu1 %597  ;;  %v325_v60 = vpop.permute.xlu0 %324 }
 0x106   : > { %v327_v61 = vpop.permute.xlu1 %326  ;;  %v329_v62 = vpop.permute.xlu0 %328 }
 0x107   : > { %v332_v63 = vsel %vm330_vm12, %v327_v61, %v329_v62  ;;  %v331_v0 = vsel %vm330_vm12, %v325_v60, %v327_v61  ;;  %v1729_v60 = vld [vmem:[%s2399_s1 + $0x18] sm:$0xf] }
 0x108   : > { %1713 = vmatprep.subr.msk.bf16.mxu0 %vm337_vm5, %v332_v63  ;;  %v339_v1 = vsel %vm337_vm5, %v331_v0, 0 }
 0x109   : > { %345 = vmatpush1.bf16.msra.mxu0 %v339_v1  ;;  %v1732_v1 = vld [vmem:[%s2399_s1 + $0x1c] sm:$0xf] }
 0x10a   : > { %v455_v3 = vpop.permute.xlu1 %454 }
 0x10b   : > { %v535_v4 = vpop.permute.xlu0 %534 }
 0x10c   : > { %1714 = vmatmul.mubr.msk.bf16.vlgmr.msra.gmra.mrb[0].mxu0 %vm333_vm6, %v1712_v2 }
 0x10d   : > { %504 = vmatprep.mubr.bf16.mxu0 %v1903_v21 }
 0x10e   : > { %v602_v5 = vpop.permute.xlu1 %601 }
 0x10f   : > { %v600_v7 = vpop.permute.xlu0 %599 }
 0x110   : > { %v604_v18 = vsel %vm603_vm14, %v598_v59, %v600_v7  ;;  %v605_v19 = vsel %vm603_vm14, %v600_v7, %v602_v5  ;;  %v1735_v7 = vld [vmem:[%s2399_s1 + $0x20] sm:$0xf] }
 0x111   : > { %v610_v30 = vsel %vm337_vm5, %v604_v18, 0 }
 0x112   : > { %v459_v8 = vpop.permute.xlu1 %458 }
 0x113   : > { %v539_v9 = vpop.permute.xlu0 %538 }
 0x116   : > { %v754_v10 = vpop.permute.xlu1 %753 }
 0x117   : > { %v457_v12 = vpop.permute.xlu0 %456 }
 0x118   : > { %v461_v13 = vsel %vm460_vm13, %v455_v3, %v457_v12  ;;  %v462_v14 = vsel %vm460_vm13, %v457_v12, %v459_v8 }
 0x119   : > { %v467_v15 = vsel %vm337_vm5, %v461_v13, 0  ;;  %1718 = vmatprep.subr.msk.bf16.mxu0 %vm337_vm5, %v462_v14 }
 0x11a   : > { %v537_v22 = vpop.permute.xlu1 %536  ;;  %473 = vmatpush1.bf16.msra.mxu0 %v467_v15 }
 0x11b   : > { %v541_v24 = vsel %vm540_vm15, %v535_v4, %v537_v22  ;;  %v542_v25 = vsel %vm540_vm15, %v537_v22, %v539_v9  ;;  %1724 = vmatprep.subr.msk.bf16.mxu0 %vm337_vm5, %v605_v19  ;;  %v676_v26 = vpop.permute.xlu0 %675 }
 0x11c   : > { %v547_v28 = vsel %vm337_vm5, %v541_v24, 0  ;;  %1721 = vmatprep.subr.msk.bf16.mxu1 %vm337_vm5, %v542_v25 }
 0x11d   : > { %1719 = vmatmul.mubr.msk.bf16.vlgmr.msra.gmra.mrb[4].mxu0 %vm333_vm6, %v1717_v23  ;;  %553 = vmatpush1.bf16.msra.mxu1 %v547_v28 }
 0x11e   : > { %v758_v32 = vpop.permute.xlu1 %757  ;;  %616 = vmatpush1.bf16.msra.mxu0 %v610_v30  ;;  %647 = vmatprep.mubr.bf16.mxu0 %v1903_v21 }
 0x11f   : > { %v680_v35 = vpop.permute.xlu0 %679 }
 0x120   : > { %1722 = vmatmul.mubr.msk.bf16.vlgmr.msra.gmra.mrb[4].mxu1 %vm333_vm6, %v1720_v31 }
 0x121   : > { %725 = vmatprep.mubr.bf16.mxu1 %v1903_v21 }
 0x122   : > { %v678_v36 = vpop.permute.xlu1 %677 }
 0x123   : > { %v682_v42 = vsel %vm681_vm0, %v676_v26, %v678_v36  ;;  %v683_v43 = vsel %vm681_vm0, %v678_v36, %v680_v35  ;;  %v817_v44 = vpop.permute.xlu0 %816 }
 0x124   : > { %v688_v46 = vsel %vm337_vm5, %v682_v42, 0  ;;  %1727 = vmatprep.subr.msk.bf16.mxu1 %vm337_vm5, %v683_v43 }
 0x125   : > { %1725 = vmatmul.mubr.msk.bf16.vlgmr.msra.gmra.mrb[8].mxu0 %vm333_vm6, %v1723_v40  ;;  %694 = vmatpush1.bf16.msra.mxu1 %v688_v46 }
 0x126   : > { %v819_v49 = vpop.permute.xlu1 %818  ;;  %803 = vmatprep.mubr.bf16.mxu0 %v1903_v21 }
 0x127   : > { %v756_v52 = vpop.permute.xlu0 %755  ;;  %v823_v58 = vsel %vm822_vm2, %v817_v44, %v819_v49 }
 0x128   : > { %v760_v54 = vsel %vm759_vm1, %v754_v10, %v756_v52  ;;  %v761_v56 = vsel %vm759_vm1, %v756_v52, %v758_v32  ;;  %1728 = vmatmul.mubr.msk.bf16.vlgmr.msra.gmra.mrb[8].mxu1 %vm333_vm6, %v1726_v48  ;;  %v829_v63 = vsel %vm337_vm5, %v823_v58, 0 }
 0x129   : > { %v766_v57 = vsel %vm337_vm5, %v760_v54, 0  ;;  %1730 = vmatprep.subr.msk.bf16.mxu0 %vm337_vm5, %v761_v56  ;;  %866 = vmatprep.mubr.bf16.mxu1 %v1903_v21 }
 0x12a   : > { %v895_v59 = vpop.permute.xlu1 %894  ;;  %772 = vmatpush1.bf16.msra.mxu0 %v766_v57 }
 0x12b   : > { %v821_v61 = vpop.permute.xlu0 %820 }
 0x12c   : > { %v824_v62 = vsel %vm822_vm2, %v819_v49, %v821_v61 }
 0x12d   : > { %1731 = vmatmul.mubr.msk.bf16.vlgmr.msra.gmra.mrb[12].mxu0 %vm333_vm6, %v1729_v60  ;;  %1733 = vmatprep.subr.msk.bf16.mxu1 %vm337_vm5, %v824_v62 }
 0x12e   : > { %v899_v0 = vpop.permute.xlu1 %898  ;;  %835 = vmatpush1.bf16.msra.mxu1 %v829_v63  ;;  %944 = vmatprep.mubr.bf16.mxu0 %v1903_v21 }
 0x12f   : > { %v897_v2 = vpop.permute.xlu0 %896 }
 0x130   : > { %v901_v3 = vsel %vm900_vm3, %v895_v59, %v897_v2  ;;  %v902_v4 = vsel %vm900_vm3, %v897_v2, %v899_v0 }
 0x131   : > { %v907_v5 = vsel %vm337_vm5, %v901_v3, 0  ;;  %1734 = vmatmul.mubr.msk.bf16.vlgmr.msra.gmra.mrb[12].mxu1 %vm333_vm6, %v1732_v1  ;;  %1736 = vmatprep.subr.msk.bf16.mxu0 %vm337_vm5, %v902_v4 }
 0x132   : > { %913 = vmatpush1.bf16.msra.mxu0 %v907_v5  ;;  %1039 = vmatprep.mubr.bf16.mxu1 %v1903_v21 }
 0x135   : > { %1737 = vmatmul.mubr.msk.bf16.vlgmr.msra.gmra.mrb[16].mxu0 %vm333_vm6, %v1735_v7 }
 0x136   : > { %1089 = vmatprep.mubr.bf16.mxu0 %v1903_v21 }
 0x16d   : > { %v428_v8 = vpop.f32.mrb[0].mxu1 }
 0x16e   : > { %v430_v9 = vpop.f32.mrb[1].mxu1 }
 0x16f   : > { %v432_v10 = vpop.f32.mrb[2].mxu1 }
 0x170   : > { %v433_v12 = vpop.f32.mrb[3].mxu1 }
 0x171   : > { %v959_v12 = vpop.permute.xlu0 %958 }
 0x1df   : > { %v378_v13 = vpop.f32.mrb[0].mxu0 }
 0x1e0   : > { %v380_v14 = vpop.f32.mrb[1].mxu0  ;;  %v429_v15 = vadd.f32 %v428_v8, %v378_v13 }
 0x1e1   : > { %v382_v18 = vpop.f32.mrb[2].mxu0  ;;  %v431_v19 = vadd.f32 %v430_v9, %v380_v14 }
 0x1e2   : > { %v383_v22 = vpop.f32.mrb[3].mxu0 }
 0x1f0   : > { %v506_v23 = vpop.f32.mrb[4].mxu0 }
 0x1f1   : > { %v513_v24 = vadd.f32 %v506_v23, %v429_v15  ;;  %v508_v25 = vpop.f32.mrb[5].mxu0 }
 0x1f2   : > { %v514_v26 = vadd.f32 %v508_v25, %v431_v19  ;;  %v510_v28 = vpop.f32.mrb[6].mxu0 }
 0x1f3   : > { %v511_v30 = vpop.f32.mrb[7].mxu0  ;;  %v586_v31 = vpop.f32.mrb[4].mxu1 }
 0x1f4   : > { %v593_v32 = vadd.f32 %v586_v31, %v513_v24  ;;  %v588_v35 = vpop.f32.mrb[5].mxu1 }
 0x1f5   : > { %v594_v36 = vadd.f32 %v588_v35, %v514_v26  ;;  %v590_v40 = vpop.f32.mrb[6].mxu1 }
 0x1f6   : > { %v591_v42 = vpop.f32.mrb[7].mxu1 }
 0x1f8   : > { %v649_v43 = vpop.f32.mrb[8].mxu0 }
 0x1f9   : > { %v656_v44 = vadd.f32 %v649_v43, %v593_v32  ;;  %v651_v46 = vpop.f32.mrb[9].mxu0 }
 0x1fa   : > { %v657_v48 = vadd.f32 %v651_v46, %v594_v36  ;;  %v653_v49 = vpop.f32.mrb[10].mxu0 }
 0x1fb   : > { %v654_v52 = vpop.f32.mrb[11].mxu0  ;;  %v727_v54 = vpop.f32.mrb[8].mxu1 }
 0x1fc   : > { %v734_v56 = vadd.f32 %v727_v54, %v656_v44  ;;  %v729_v57 = vpop.f32.mrb[9].mxu1 }
 0x1fd   : > { %v735_v58 = vadd.f32 %v729_v57, %v657_v48  ;;  %v731_v59 = vpop.f32.mrb[10].mxu1 }
 0x1fe   : > { %v732_v60 = vpop.f32.mrb[11].mxu1 }
 0x200   : > { %v805_v61 = vpop.f32.mrb[12].mxu0 }
 0x201   : > { %v812_v62 = vadd.f32 %v805_v61, %v734_v56  ;;  %v807_v63 = vpop.f32.mrb[13].mxu0 }
 0x202   : > { %v813_v0 = vadd.f32 %v807_v63, %v735_v58  ;;  %v809_v1 = vpop.f32.mrb[14].mxu0 }
 0x203   : > { %v810_v2 = vpop.f32.mrb[15].mxu0 }
 0x204   : > { %v868_v3 = vpop.f32.mrb[12].mxu1 }
 0x205   : > { %v875_v4 = vadd.f32 %v868_v3, %v812_v62  ;;  %v870_v5 = vpop.f32.mrb[13].mxu1 }
 0x206   : > { %v876_v7 = vadd.f32 %v870_v5, %v813_v0  ;;  %v872_v8 = vpop.f32.mrb[14].mxu1 }
 0x207   : > { %v873_v9 = vpop.f32.mrb[15].mxu1 }
 0x208   : > { %v946_v10 = vpop.f32.mrb[16].mxu0  ;;  %v1743_v9 = vld [vmem:[%s2401_s3 + $0x8] sm:$0xf] }
 0x209   : > { %v953_v13 = vadd.f32 %v946_v10, %v875_v4  ;;  %v948_v14 = vpop.f32.mrb[17].mxu0 }
 0x20a   : > { %v954_v15 = vadd.f32 %v948_v14, %v876_v7  ;;  %v950_v18 = vpop.f32.mrb[18].mxu0 }
 0x20b   : > { %v961_v19 = vadd.f32 %v959_v12, %v953_v13  ;;  %v951_v22 = vpop.f32.mrb[19].mxu0  ;;  %v1746_v18 = vld [vmem:[%s2401_s3 + $0xc] sm:$0xf] }
 0x20c   : > { %v962_v23 = vadd.f32 %v959_v12, %v954_v15 }
 0x20d   : > { %v963_v24 = vmax.f32 %v961_v19, 0.0 }
 0x20e   : > { %v964_v25 = vmax.f32 %v962_v23, 0.0 }
 0x20f   : > { %v965_v26 = vpack.c.bf16 %v963_v24, %v963_v24  ;;  %v1749_v24 = vld [vmem:[%s2401_s3 + $0x10] sm:$0xf] }
 0x210   : > { %v966_v28 = vpack.c.bf16 %v964_v25, %v964_v25 }
 0x211   : > { %969 = vrot.lane.b32.xlu1 %v965_v26, %s1895_s14 }
 0x215   : > { %971 = vrot.lane.b32.xlu1 %v966_v28, %s1895_s14 }
 0x283   : > { %v970_v30 = vpop.permute.xlu1 %969 }
 0x284   : > { %v976_v31 = vsel %vm306_vm4, 0, %v970_v30 }
 0x285   : > { %1236 = vrot.lane.b32.xlu1 %v976_v31, %s1901_s20  ;;  %988 = vrot.lane.b32.xlu0 %v976_v31, %s1902_s26  ;;  %v981_v35 = vmul.bf16 %v976_v31, %v2007_v16  ;;  %v983_v16 = vld [vmem:[%s2401_s3] sm:$0xf]  ;;  %v1166_v44 = vmul.bf16 %v976_v31, %v2046_v29  ;;  %v1098_v46 = vmul.bf16 %v976_v31, %v2018_v20 }
 0x286   : > { %v1364_v49 = vmul.bf16 %v976_v31, %v2070_v37 }
 0x287   : > { %v972_v32 = vpop.permute.xlu1 %971  ;;  %v1052_v43 = vsel %vm1000_vm7, %v981_v35, 0 }
 0x288   : > { %v973_v36 = vsel %vm306_vm4, %v970_v30, %v972_v32  ;;  %v979_v40 = vsel %vm306_vm4, %v972_v32, 0  ;;  %vm996_vm4 = vcmask 64512  }
 0x289   : > { %992 = vrot.lane.b32.xlu0 %v979_v40, %s1902_s26  ;;  %990 = vrot.lane.b32.xlu1 %v973_v36, %s1902_s26  ;;  %v982_v42 = vmul.bf16 %v973_v36, %v2009_v17  ;;  %v1296_v17 = vmul.bf16 %v976_v31, %v2056_v33  ;;  %v1100_v48 = vmul.bf16 %v979_v40, %v2041_v27 }
 0x28a   : > { %v1167_v29 = vmul.bf16 %v973_v36, %v2084_v41  ;;  %v1099_v20 = vmul.bf16 %v973_v36, %v2074_v38  ;;  %v1168_v52 = vmul.bf16 %v979_v40, %v2059_v34  ;;  %v1297_v27 = vmul.bf16 %v973_v36, %v2102_v47 }
 0x28b   : > { %1741 = vmatprep.subr.msk.bf16.mxu0 %vm1000_vm7, %v982_v42  ;;  %v1298_v33 = vmul.bf16 %v979_v40, %v2077_v39  ;;  %v1366_v37 = vmul.bf16 %v979_v40, %v2094_v45  ;;  %v1365_v34 = vmul.bf16 %v973_v36, %v2112_v50  ;;  %v1494_v38 = vmul.bf16 %v976_v31, %v2117_v51  ;;  %v1615_v45 = vld [vmem:[%s2403_s5] sm:$0xff] }
 0x28c   : > { %1058 = vmatpush1.bf16.msra.mxu0 %v1052_v43  ;;  %v1496_v39 = vmul.bf16 %v979_v40, %v2123_v53  ;;  %v1495_v41 = vmul.bf16 %v973_v36, %v2130_v55  ;;  %v1738_v55 = vld [vmem:[%s2401_s3 + $0x4] sm:$0xf] }
 0x28d   : > { %1238 = vrot.lane.b32.xlu0 %v973_v36, %s1901_s20  ;;  %1240 = vrot.lane.b32.xlu1 %v979_v40, %s1901_s20 }
 0x28f   : > { %1742 = vmatmul.mubr.msk.bf16.vlgmr.msra.gmra.mrb[20].mxu0 %vm996_vm4, %v983_v16  ;;  %v1755_v16 = vld [vmem:[%s2401_s3 + $0x18] sm:$0xf] }
 0x290   : > { %1223 = vmatprep.mubr.bf16.mxu0 %v1903_v21 }
 0x291   : > { %1174 = vrot.lane.b32.xlu0 %v1166_v44, %s1905_s10  ;;  %1106 = vrot.lane.b32.xlu1 %v1098_v46, %s1904_s9 }
 0x295   : > { %1304 = vrot.lane.b32.xlu0 %v1296_v17, %s1907_s12  ;;  %1110 = vrot.lane.b32.xlu1 %v1100_v48, %s1904_s9 }
 0x299   : > { %1176 = vrot.lane.b32.xlu1 %v1167_v29, %s1905_s10  ;;  %1108 = vrot.lane.b32.xlu0 %v1099_v20, %s1904_s9  ;;  %v1758_v29 = vld [vmem:[%s2401_s3 + $0x1c] sm:$0xf] }
 0x29d   : > { %1372 = vrot.lane.b32.xlu1 %v1364_v49, %s1906_s11  ;;  %1178 = vrot.lane.b32.xlu0 %v1168_v52, %s1905_s10  ;;  %v1567_v52 = vsel %vm337_vm5, %v1999_v6, 0  ;;  %v1562_v6 = vld [vmem:[%s2402_s4] sm:$0xf] }
 0x2a1   : > { %1306 = vrot.lane.b32.xlu1 %v1297_v27, %s1907_s12  ;;  %1434 = vrot.lane.b32.xlu0 %v976_v31, %s1908_s13  ;;  %v1752_v31 = vld [vmem:[%s2401_s3 + $0x14] sm:$0xf] }
 0x2a5   : > { %1436 = vrot.lane.b32.xlu1 %v973_v36, %s1908_s13  ;;  %1308 = vrot.lane.b32.xlu0 %v1298_v33, %s1907_s12  ;;  %s242_s12 = sand.u32 1, %s1884_s22  }
 0x2a6   : > { %s1628_s14 = scalar_lea.sflag [#allocation3], %s242_s12 }
 0x2a9   : > { %1376 = vrot.lane.b32.xlu1 %v1366_v37, %s1906_s11  ;;  %1374 = vrot.lane.b32.xlu0 %v1365_v34, %s1906_s11  ;;  %v1761_v34 = vld [vmem:[%s2401_s3 + $0x20] sm:$0xf] }
 0x2ad   : > { %1502 = vrot.lane.b32.xlu1 %v1494_v38, %s1909_s15  ;;  %1438 = vrot.lane.b32.xlu0 %v979_v40, %s1908_s13  ;;  %s1705_s13 = sshll.u32 %s242_s12, 4 }
 0x2ae   : > { %s244_s17 = scalar_lea.vmem [#allocation2], %s1705_s13 }
 0x2af   : > { %s1642_s18 = sshll.u32 %s244_s17, 4  ;;  %s2358_s18 = int_to_ptr.vmem [resolvable:$true] %s1642_s18 }
 0x2b0   : > { %s1830_s16 = scalar_lea.vmem %s2358_s18, 256 }
 0x2b1   : > { %1506 = vrot.lane.b32.xlu1 %v1496_v39, %s1909_s15  ;;  %1504 = vrot.lane.b32.xlu0 %v1495_v41, %s1909_s15  ;;  %s1772_s15 = sshll.u32 %s1967_s25, 8  ;;  %p1831_p11 = scmp.ne.s32.totalorder %s2358_s18, %s1830_s16 }
 0x2b2   : > { %s2356_s29 = scalar_lea.hbm %s2404_s6, %s1772_s15  ;;  %s1910_s25 = smov [#allocation2]  }
 0x2b3   : > { %p1832_p12 = pnand %p1831_p11, %p1984_p5  ;;  %s1834_s20 = sshll.u32 %s1910_s25, 4  ;;  %s1835_s20 = int_to_ptr.vmem [resolvable:$false] %s1834_s20 }
 0x2b4   : > { %s1836_s26 = scalar_lea.vmem %s1835_s20, 512  ;;  %p1837_p0 = scmp.lt.s32.totalorder %s2358_s18, %s1835_s20 }
 0x2b5   : > { %1618 = vperm.xlu0 %1828, %v1615_v45   ;;  %p1833_p13 = pneg %p1832_p12  ;;  %p1838_p1 = scmp.lt.s32.totalorder %s1836_s26, %s1830_s16 }
 0x2b7   : > { %p1839_p2 = por %p1838_p1, %p1837_p0 }
 0x2b9   : > { %p1840_p3 = pnand %p1839_p2, %p1833_p13 }
 0x2f7   : > { %v989_v47 = vpop.permute.xlu0 %988  ;;  %v1237_v50 = vpop.permute.xlu1 %1236 }
 0x2fb   : > { %v993_v51 = vpop.permute.xlu0 %992  ;;  %v991_v54 = vpop.permute.xlu1 %990 }
 0x2fc   : > { %v994_v56 = vsel %vm330_vm12, %v989_v47, %v991_v54  ;;  %v995_v57 = vsel %vm330_vm12, %v991_v54, %v993_v51 }
 0x2fd   : > { %v1002_v53 = vsel %vm1000_vm7, %v994_v56, 0  ;;  %1739 = vmatprep.subr.msk.bf16.mxu1 %vm1000_vm7, %v995_v57 }
 0x2fe   : > { %1008 = vmatpush1.bf16.msra.mxu1 %v1002_v53 }
 0x2ff   : > { %v1239_v58 = vpop.permute.xlu0 %1238  ;;  %v1241_v59 = vpop.permute.xlu1 %1240 }
 0x300   : > { %v1242_v5 = vsel %vm603_vm14, %v1237_v50, %v1239_v58  ;;  %v1243_v7 = vsel %vm603_vm14, %v1239_v58, %v1241_v59 }
 0x301   : > { %1740 = vmatmul.mubr.msk.bf16.vlgmr.msra.gmra.mrb[16].mxu1 %vm996_vm4, %v1738_v55  ;;  %v1248_v14 = vsel %vm1000_vm7, %v1242_v5, 0 }
 0x302   : > { %1155 = vmatprep.mubr.bf16.mxu1 %v1903_v21 }
 0x303   : > { %v1175_v60 = vpop.permute.xlu0 %1174  ;;  %v1107_v61 = vpop.permute.xlu1 %1106 }
 0x307   : > { %v1305_v62 = vpop.permute.xlu0 %1304  ;;  %v1111_v63 = vpop.permute.xlu1 %1110 }
 0x30b   : > { %v1109_v0 = vpop.permute.xlu0 %1108  ;;  %v1177_v1 = vpop.permute.xlu1 %1176 }
 0x30c   : > { %v1112_v2 = vsel %vm460_vm13, %v1107_v61, %v1109_v0  ;;  %v1113_v3 = vsel %vm460_vm13, %v1109_v0, %v1111_v63  ;;  %v1180_v8 = vsel %vm540_vm15, %v1175_v60, %v1177_v1 }
 0x30d   : > { %v1118_v4 = vsel %vm1000_vm7, %v1112_v2, 0  ;;  %1744 = vmatprep.subr.msk.bf16.mxu1 %vm1000_vm7, %v1113_v3  ;;  %v1186_v15 = vsel %vm1000_vm7, %v1180_v8, 0 }
 0x30e   : > { %1124 = vmatpush1.bf16.msra.mxu1 %v1118_v4 }
 0x30f   : > { %v1179_v10 = vpop.permute.xlu0 %1178  ;;  %1750 = vmatprep.subr.msk.bf16.mxu1 %vm1000_vm7, %v1243_v7  ;;  %v1373_v12 = vpop.permute.xlu1 %1372 }
 0x310   : > { %v1181_v13 = vsel %vm540_vm15, %v1177_v1, %v1179_v10 }
 0x311   : > { %1745 = vmatmul.mubr.msk.bf16.vlgmr.msra.gmra.mrb[20].mxu1 %vm996_vm4, %v1743_v9  ;;  %1747 = vmatprep.subr.msk.bf16.mxu0 %vm1000_vm7, %v1181_v13 }
 0x312   : > { %1192 = vmatpush1.bf16.msra.mxu0 %v1186_v15  ;;  %1254 = vmatpush1.bf16.msra.mxu1 %v1248_v14 }
 0x313   : > { %v1435_v19 = vpop.permute.xlu0 %1434  ;;  %v1307_v22 = vpop.permute.xlu1 %1306  ;;  %1285 = vmatprep.mubr.bf16.mxu1 %v1903_v21 }
 0x314   : > { %v1310_v23 = vsel %vm681_vm0, %v1305_v62, %v1307_v22 }
 0x315   : > { %1748 = vmatmul.mubr.msk.bf16.vlgmr.msra.gmra.mrb[24].mxu0 %vm996_vm4, %v1746_v18  ;;  %v1316_v30 = vsel %vm1000_vm7, %v1310_v23, 0 }
 0x316   : > { %1353 = vmatprep.mubr.bf16.mxu0 %v1903_v21 }
 0x317   : > { %v1309_v25 = vpop.permute.xlu0 %1308  ;;  %v1437_v26 = vpop.permute.xlu1 %1436 }
 0x318   : > { %v1311_v28 = vsel %vm681_vm0, %v1307_v22, %v1309_v25  ;;  %v1440_v43 = vsel %vm822_vm2, %v1435_v19, %v1437_v26 }
 0x319   : > { %1751 = vmatmul.mubr.msk.bf16.vlgmr.msra.gmra.mrb[24].mxu1 %vm996_vm4, %v1749_v24  ;;  %1753 = vmatprep.subr.msk.bf16.mxu0 %vm1000_vm7, %v1311_v28  ;;  %v1446_v48 = vsel %vm1000_vm7, %v1440_v43, 0 }
 0x31a   : > { %1322 = vmatpush1.bf16.msra.mxu0 %v1316_v30  ;;  %1421 = vmatprep.mubr.bf16.mxu1 %v1903_v21 }
 0x31b   : > { %v1375_v32 = vpop.permute.xlu0 %1374  ;;  %v1377_v35 = vpop.permute.xlu1 %1376 }
 0x31c   : > { %v1378_v36 = vsel %vm759_vm1, %v1373_v12, %v1375_v32  ;;  %v1379_v40 = vsel %vm759_vm1, %v1375_v32, %v1377_v35 }
 0x31d   : > { %v1384_v42 = vsel %vm1000_vm7, %v1378_v36, 0  ;;  %1754 = vmatmul.mubr.msk.bf16.vlgmr.msra.gmra.mrb[28].mxu0 %vm996_vm4, %v1752_v31  ;;  %1756 = vmatprep.subr.msk.bf16.mxu1 %vm1000_vm7, %v1379_v40 }
 0x31e   : > { %1390 = vmatpush1.bf16.msra.mxu1 %v1384_v42  ;;  %1483 = vmatprep.mubr.bf16.mxu0 %v1903_v21 }
 0x31f   : > { %v1439_v44 = vpop.permute.xlu0 %1438  ;;  %v1503_v46 = vpop.permute.xlu1 %1502 }
 0x320   : > { %v1441_v17 = vsel %vm822_vm2, %v1437_v26, %v1439_v44 }
 0x321   : > { %1757 = vmatmul.mubr.msk.bf16.vlgmr.msra.gmra.mrb[28].mxu1 %vm996_vm4, %v1755_v16  ;;  %1759 = vmatprep.subr.msk.bf16.mxu0 %vm1000_vm7, %v1441_v17 }
 0x322   : > { %1452 = vmatpush1.bf16.msra.mxu0 %v1446_v48  ;;  %1551 = vmatprep.mubr.bf16.mxu1 %v1903_v21 }
 0x323   : > { %v1505_v20 = vpop.permute.xlu0 %1504  ;;  %v1507_v49 = vpop.permute.xlu1 %1506  ;;  %1764 = vmatprep.subr.msk.bf16.mxu0 %vm337_vm5, %v2003_v11 }
 0x324   : > { %v1508_v27 = vsel %vm900_vm3, %v1503_v46, %v1505_v20  ;;  %v1509_v33 = vsel %vm900_vm3, %v1505_v20, %v1507_v49 }
 0x325   : > { %v1514_v37 = vsel %vm1000_vm7, %v1508_v27, 0  ;;  %1760 = vmatmul.mubr.msk.bf16.vlgmr.msra.gmra.mrb[32].mxu0 %vm996_vm4, %v1758_v29  ;;  %1762 = vmatprep.subr.msk.bf16.mxu1 %vm1000_vm7, %v1509_v33 }
 0x326   : > { %1520 = vmatpush1.bf16.msra.mxu1 %v1514_v37  ;;  %1573 = vmatpush1.bf16.msra.mxu0 %v1567_v52 }
 0x327   : > { %1604 = vmatprep.mubr.bf16.mxu0 %v1903_v21 }
 0x329   : > { %1763 = vmatmul.mubr.msk.bf16.vlgmr.msra.gmra.mrb[32].mxu1 %vm996_vm4, %v1761_v34 }
 0x32d   : > { %1765 = vmatmul.mubr.msk.bf16.vlgmr.msra.gmra.mrb[36].mxu0 %vm333_vm6, %v1562_v6 }
 0x334   : > { %v1619_v29 = vpop.permute.xlu0 %1618 }
 0x362   : > { %v1091_v11 = vpop.f32.mrb[20].mxu0 }
 0x363   : > { %v1093_v38 = vpop.f32.mrb[21].mxu0 }
 0x364   : > { %v1095_v39 = vpop.f32.mrb[22].mxu0 }
 0x365   : > { %v1096_v41 = vpop.f32.mrb[23].mxu0 }
 0x3d4   : > { %v1041_v45 = vpop.f32.mrb[16].mxu1 }
 0x3d5   : > { %v1043_v47 = vpop.f32.mrb[17].mxu1  ;;  %v1092_v50 = vadd.f32 %v1091_v11, %v1041_v45 }
 0x3d6   : > { %v1045_v51 = vpop.f32.mrb[18].mxu1  ;;  %v1094_v54 = vadd.f32 %v1093_v38, %v1043_v47 }
 0x3d7   : > { %v1046_v56 = vpop.f32.mrb[19].mxu1 }
 0x3e4   : > { %v1157_v57 = vpop.f32.mrb[20].mxu1 }
 0x3e5   : > { %v1164_v21 = vadd.f32 %v1157_v57, %v1092_v50  ;;  %v1159_v53 = vpop.f32.mrb[21].mxu1 }
 0x3e6   : > { %v1165_v55 = vadd.f32 %v1159_v53, %v1094_v54  ;;  %v1161_v58 = vpop.f32.mrb[22].mxu1 }
 0x3e7   : > { %v1162_v59 = vpop.f32.mrb[23].mxu1 }
 0x3e8   : > { %v1225_v60 = vpop.f32.mrb[24].mxu0 }
 0x3e9   : > { %v1232_v61 = vadd.f32 %v1225_v60, %v1164_v21  ;;  %v1227_v62 = vpop.f32.mrb[25].mxu0 }
 0x3ea   : > { %v1233_v63 = vadd.f32 %v1227_v62, %v1165_v55  ;;  %v1229_v0 = vpop.f32.mrb[26].mxu0 }
 0x3eb   : > { %v1230_v1 = vpop.f32.mrb[27].mxu0 }
 0x3ec   : > { %v1287_v2 = vpop.f32.mrb[24].mxu1 }
 0x3ed   : > { %v1294_v3 = vadd.f32 %v1287_v2, %v1232_v61  ;;  %v1289_v4 = vpop.f32.mrb[25].mxu1 }
 0x3ee   : > { %v1295_v5 = vadd.f32 %v1289_v4, %v1233_v63  ;;  %v1291_v7 = vpop.f32.mrb[26].mxu1 }
 0x3ef   : > { %v1292_v8 = vpop.f32.mrb[27].mxu1 }
 0x3f0   : > { %v1355_v9 = vpop.f32.mrb[28].mxu0 }
 0x3f1   : > { %v1362_v10 = vadd.f32 %v1355_v9, %v1294_v3  ;;  %v1357_v12 = vpop.f32.mrb[29].mxu0 }
 0x3f2   : > { %v1363_v13 = vadd.f32 %v1357_v12, %v1295_v5  ;;  %v1359_v14 = vpop.f32.mrb[30].mxu0 }
 0x3f3   : > { %v1360_v15 = vpop.f32.mrb[31].mxu0 }
 0x3f4   : > { %v1423_v18 = vpop.f32.mrb[28].mxu1 }
 0x3f5   : > { %v1430_v19 = vadd.f32 %v1423_v18, %v1362_v10  ;;  %v1425_v22 = vpop.f32.mrb[29].mxu1 }
 0x3f6   : > { %v1431_v23 = vadd.f32 %v1425_v22, %v1363_v13  ;;  %v1427_v24 = vpop.f32.mrb[30].mxu1 }
 0x3f7   : > { %v1428_v25 = vpop.f32.mrb[31].mxu1 }
 0x3f8   : > { %v1485_v26 = vpop.f32.mrb[32].mxu0 }
 0x3f9   : > { %v1492_v28 = vadd.f32 %v1485_v26, %v1430_v19  ;;  %v1487_v30 = vpop.f32.mrb[33].mxu0 }
 0x3fa   : > { %v1493_v31 = vadd.f32 %v1487_v30, %v1431_v23  ;;  %v1489_v32 = vpop.f32.mrb[34].mxu0 }
 0x3fb   : > { %v1490_v35 = vpop.f32.mrb[35].mxu0 }
 0x3fc   : > { %v1553_v36 = vpop.f32.mrb[32].mxu1 }
 0x3fd   : > { %v1560_v40 = vadd.f32 %v1553_v36, %v1492_v28  ;;  %v1555_v42 = vpop.f32.mrb[33].mxu1 }
 0x3fe   : > { %v1561_v43 = vadd.f32 %v1555_v42, %v1493_v31  ;;  %v1557_v16 = vpop.f32.mrb[34].mxu1 }
 0x3ff   : > { %v1558_v44 = vpop.f32.mrb[35].mxu1 }
 0x400   : > { %v1606_v46 = vpop.f32.mrb[36].mxu0 }
 0x401   : > { %v1613_v17 = vadd.f32 %v1606_v46, %v1560_v40  ;;  %v1608_v48 = vpop.f32.mrb[37].mxu0 }
 0x402   : > { %v1614_v20 = vadd.f32 %v1608_v48, %v1561_v43  ;;  %v1610_v49 = vpop.f32.mrb[38].mxu0 }
 0x403   : > { %v1621_v52 = vadd.f32 %v1619_v29, %v1613_v17  ;;  %v1611_v27 = vpop.f32.mrb[39].mxu0 }
 0x404   : > { %v1622_v33 = vadd.f32 %v1619_v29, %v1614_v20 }
 0x405   : > { %v1623_v37 = vmax.f32 %v1621_v52, 0.0 }
 0x406   : > { %v1624_v34 = vmax.f32 %v1622_v33, 0.0 }
 0x407   : > { %1625 = vst [vmem:[%s244_s17] sm:$0xff] %v1623_v37 }
 0x408   : > { %1626 = vst [vmem:[%s244_s17 + $0x8] sm:$0xff] %v1624_v34 }
 0x409   : > { %1843 = shalt.err (!%p1840_p3)
}
 0x40a   : > { %s1844_s9 = scalar_lea.hbm %s2356_s29, 256  ;;  %s1848_s12 = scalar_lea.hbm %s2404_s6, 512 }
 0x40b   : > { %p1845_p4 = scmp.ne.s32.totalorder %s2356_s29, %s1844_s9  ;;  %p1849_p9 = scmp.lt.u32.totalorder %s2356_s29, %s2404_s6 }
 0x40c   : > { %p1850_p10 = scmp.lt.u32.totalorder %s1848_s12, %s1844_s9  ;;  %p1852_p12 = scmp.lt.u32.totalorder %s1844_s9, %s2356_s29 }
 0x40d   : > { %p1846_p7 = pnand %p1845_p4, %p1984_p5 }
 0x40e   : > { %p1851_p11 = por %p1850_p10, %p1849_p9 }
 0x40f   : > { %p1847_p8 = pneg %p1846_p7 }
 0x410   : > { %p1853_p13 = por %p1852_p12, %p1851_p11 }
 0x412   : > { %p1854_p0 = pnand %p1853_p13, %p1847_p8 }
 0x414   : > { %1857 = shalt.err (!%p1854_p0)
}
 0x415   : > { %1773 = dma.vmem_to_hbm [thread:$0]  (%p1984_p5), %s2358_s18, 256, %s2356_s29, %s1628_s14  }
 0x416 PF: > { %p1779_p1 = scmp.ge.s32.totalorder %s1892_s24, 2  ;;  %s1654_s17 = sand.u32 1, %s1880_s21  }
 0x417   : > { %s1655_s19 = scalar_lea.sflag [#allocation3], %s1654_s17 }
 0x418   : > { %p1776_p2 = pnand %p1779_p1, %p1988_p6 }
 0x41a   : > { %1875 = dma.done.wait (!%p1776_p2), %s1655_s19, 256  }
 0x41b   : > { %1877 = vsyncadd (!%p1776_p2), %s1655_s19, 4294967040  ;;  %p16_p3 = scmp.ge.s32.totalorder %s1971_s27, 4   ;;  %s2407_s21 = smov %s1884_s22 }
 0x41c   : > { %s2408_s22 = smov %s1888_s23  ;;  %s2409_s23 = smov %s1982_s30 }
 0x41d   : > { %s2410_s24 = smov %s1971_s27  ;;  %18 = sbr.rel (!%p16_p3) target bundleno = 3 (0x3), region = 95 }
 0x424   :  { %1660 = vsyncpa [#allocation3], 1 }
 0x425   :  { %1662 = vsyncpa [#allocation3 + $0x1], 1 }

</bundles_post_ra>
